<compile_context>
chip_gen: v6e
topology: v6e:2x2x1
jax: 0.10.0
libtpu: 0.0.40
codegen_flags: <defaults>
</compile_context>

<pallas_src>
import functools
import math

import jax
import jax.numpy as jnp
from jax import lax
from jax.experimental import pallas as pl
from jax.experimental.pallas import tpu as pltpu


def _flash_attn_kernel(q_ref, k_ref, v_ref, o_ref, m_sc, l_sc, acc_sc, *, scale):
    """One (query-tile, kv-tile) step of online-softmax attention.

    q_ref: (tq, D)  k_ref/v_ref: (tk, D)  o_ref: (tq, D)
    m_sc/l_sc: (tq, 1) f32 running max / running denominator
    acc_sc:    (tq, D) f32 unnormalized output accumulator
    """
    ki = pl.program_id(2)

    @pl.when(ki == 0)
    def _init():
        m_sc[...] = jnp.full_like(m_sc, -jnp.inf)
        l_sc[...] = jnp.zeros_like(l_sc)
        acc_sc[...] = jnp.zeros_like(acc_sc)

    # Fold the softmax scale into q: tq*D multiplies instead of tq*tk.
    q = q_ref[...] * scale

    # scores = q @ k^T without an explicit transpose: contract the last dims.
    s = lax.dot_general(
        q, k_ref[...],
        dimension_numbers=(((1,), (1,)), ((), ())),
        preferred_element_type=jnp.float32,
    )  # (tq, tk) in f32

    m_prev = m_sc[...]
    m_new = jnp.maximum(m_prev, jnp.max(s, axis=-1, keepdims=True))
    alpha = jnp.exp(m_prev - m_new)          # rescale factor for previous tiles
    p = jnp.exp(s - m_new)                   # unnormalized probabilities (tq, tk)

    l_sc[...] = alpha * l_sc[...] + jnp.sum(p, axis=-1, keepdims=True)
    acc_sc[...] = alpha * acc_sc[...] + jnp.dot(
        p.astype(v_ref.dtype), v_ref[...], preferred_element_type=jnp.float32)
    m_sc[...] = m_new

    # Normalize once after the last KV tile; reciprocal goes to the (idle) EUP slot.
    @pl.when(ki == pl.num_programs(2) - 1)
    def _finalize():
        inv_l = pl.reciprocal(l_sc[...], approx=True)
        o_ref[...] = (acc_sc[...] * inv_l).astype(o_ref.dtype)


def _choose_tile(s, target):
    """Largest tile <= target that divides s (multiple of 8), else full s."""
    if s <= target:
        return s
    for t in range(target, 7, -8):
        if s % t == 0:
            return t
    return s


def efficient_attention(query, key, value, *, hidden_size=None,
                        tq_target=256, tk_target=256):
    """Pallas implementation of EfficientAttention.forward.

    query, key, value: (B, S, D). Returns (B, S, D).
    scale = 1 / sqrt(hidden_size); defaults to D (matches the module ctor arg).
    """
    B, S, D = query.shape
    if hidden_size is None:
        hidden_size = D
    scale = 1.0 / math.sqrt(hidden_size)

    # Lane-dense output: pad the feature dim to a multiple of 128 so output
    # stores are full-lane (unmasked) vst's. Zero-padding changes neither the
    # q.k^T scores nor the valid output columns.
    D_pad = ((D + 127) // 128) * 128
    if D_pad != D:
        pad = [(0, 0), (0, 0), (0, D_pad - D)]
        query = jnp.pad(query, pad)
        key = jnp.pad(key, pad)
        value = jnp.pad(value, pad)

    # Flash tiles: 256-aligned when S allows (good for v6e's 256-wide MXU),
    # small enough that the working set stays well under the 32 MiB scoped
    # VMEM default (and v7x's 64 MiB physical VMEM).
    tq = _choose_tile(S, tq_target)
    tk = _choose_tile(S, tk_target)
    grid = (B, S // tq, S // tk)

    q_spec = pl.BlockSpec((pl.Squeezed(), tq, D_pad), lambda b, qi, ki: (b, qi, 0))
    k_spec = pl.BlockSpec((pl.Squeezed(), tk, D_pad), lambda b, qi, ki: (b, ki, 0))
    v_spec = pl.BlockSpec((pl.Squeezed(), tk, D_pad), lambda b, qi, ki: (b, ki, 0))
    o_spec = pl.BlockSpec((pl.Squeezed(), tq, D_pad), lambda b, qi, ki: (b, qi, 0))

    kernel = functools.partial(_flash_attn_kernel, scale=scale)

    itemsize = jnp.dtype(query.dtype).itemsize
    cost = pl.CostEstimate(
        flops=4 * B * S * S * D_pad,          # QK^T + PV
        transcendentals=B * S * S,            # exp
        bytes_accessed=4 * B * S * D_pad * itemsize,
    )

    out = pl.pallas_call(
        kernel,
        out_shape=jax.ShapeDtypeStruct((B, S, D_pad), query.dtype),
        grid_spec=pltpu.PrefetchScalarGridSpec(
            num_scalar_prefetch=0,
            grid=grid,
            in_specs=[q_spec, k_spec, v_spec],
            out_specs=o_spec,
            scratch_shapes=[
                pltpu.VMEM((tq, 1), jnp.float32),      # running max
                pltpu.VMEM((tq, 1), jnp.float32),      # running denominator
                pltpu.VMEM((tq, D_pad), jnp.float32),  # unnormalized accumulator
            ],
        ),
        compiler_params=pltpu.CompilerParams(
            dimension_semantics=("parallel", "parallel", "arbitrary"),
            vmem_limit_bytes=32 * 1024 * 1024,
        ),
        cost_estimate=cost,
    )(query, key, value)

    if D_pad != D:
        out = out[..., :D]
    return out


def _reference_attention(query, key, value, hidden_size):
    scale = 1.0 / math.sqrt(hidden_size)
    scores = jnp.einsum("bqd,bkd->bqk", query, key) * scale
    weights = jax.nn.softmax(scores, axis=-1)
    return jnp.einsum("bqk,bkd->bqd", weights, value)


if __name__ == "__main__":
    # Small shapes consistent with the module: batch=2, seq=8, hidden=32.
    B, S, D = 2, 8, 32
    key0 = jax.random.PRNGKey(0)
    kq, kk, kv = jax.random.split(key0, 3)
    query = jax.random.normal(kq, (B, S, D), dtype=jnp.float32)
    key_ = jax.random.normal(kk, (B, S, D), dtype=jnp.float32)
    value = jax.random.normal(kv, (B, S, D), dtype=jnp.float32)

    out = efficient_attention(query, key_, value, hidden_size=D)
    out = jax.block_until_ready(out)

    ref = _reference_attention(query, key_, value, D)
    assert out.shape == (B, S, D)
    # Tolerance loosened slightly (vs 1e-5) for the approx EUP reciprocal.
    assert jnp.allclose(out, ref, atol=2e-3, rtol=2e-3), "mismatch vs reference"

    print("KERNEL_OK")
</pallas_src>

<mosaic_0001>
module attributes {stable_mosaic.version = 11 : i64} {
  func.func @_flash_attn_kernel(%arg0: i32, %arg1: i32, %arg2: i32, %arg3: memref<1x8x128xf32, #tpu.memory_space<vmem>>, %arg4: memref<1x8x128xf32, #tpu.memory_space<vmem>>, %arg5: memref<1x8x128xf32, #tpu.memory_space<vmem>>, %arg6: memref<1x8x128xf32, #tpu.memory_space<vmem>>, %arg7: memref<8x1xf32, #tpu.memory_space<vmem>>, %arg8: memref<8x1xf32, #tpu.memory_space<vmem>>, %arg9: memref<8x128xf32, #tpu.memory_space<vmem>>) attributes {dimension_semantics = [#tpu.dimension_semantics<parallel>, #tpu.dimension_semantics<parallel>, #tpu.dimension_semantics<arbitrary>], iteration_bounds = array<i64: 2, 1, 1>, scalar_prefetch = 0 : i64, scratch_operands = 3 : i64, tpu.core_type = #tpu.core_type<tc>, window_params = [{transform_indices = @transform_0, window_bounds = array<i64: 1, 8, 128>}, {transform_indices = @transform_1, window_bounds = array<i64: 1, 8, 128>}, {transform_indices = @transform_2, window_bounds = array<i64: 1, 8, 128>}, {transform_indices = @transform_3, window_bounds = array<i64: 1, 8, 128>}]} {
    %c0_i32 = arith.constant 0 : i32
    %0 = arith.cmpi eq, %arg2, %c0_i32 : i32
    %1 = arith.extui %0 : i1 to i32
    %c0_i32_0 = arith.constant 0 : i32
    %2 = arith.cmpi ne, %1, %c0_i32_0 : i32
    scf.if %2 {
      %cst_27 = arith.constant 0xFF800000 : f32
      %37 = vector.broadcast %cst_27 : f32 to vector<8x1xf32>
      %c0_28 = arith.constant 0 : index
      %c0_29 = arith.constant 0 : index
      %38 = vector.load %arg7[%c0_28, %c0_29] : memref<8x1xf32, #tpu.memory_space<vmem>>, vector<8x1xf32>
      tpu.vector_store %arg7[%c0_28, %c0_29], %37 {strides = array<i32>} : memref<8x1xf32, #tpu.memory_space<vmem>>, vector<8x1xf32>,
      %cst_30 = arith.constant 0.000000e+00 : f32
      %39 = vector.broadcast %cst_30 : f32 to vector<8x1xf32>
      %c0_31 = arith.constant 0 : index
      %c0_32 = arith.constant 0 : index
      %40 = vector.load %arg8[%c0_31, %c0_32] : memref<8x1xf32, #tpu.memory_space<vmem>>, vector<8x1xf32>
      tpu.vector_store %arg8[%c0_31, %c0_32], %39 {strides = array<i32>} : memref<8x1xf32, #tpu.memory_space<vmem>>, vector<8x1xf32>,
      %cst_33 = arith.constant 0.000000e+00 : f32
      %41 = vector.broadcast %cst_33 : f32 to vector<8x128xf32>
      %c0_34 = arith.constant 0 : index
      %c0_35 = arith.constant 0 : index
      %42 = vector.load %arg9[%c0_34, %c0_35] : memref<8x128xf32, #tpu.memory_space<vmem>>, vector<8x128xf32>
      tpu.vector_store %arg9[%c0_34, %c0_35], %41 {strides = array<i32>} : memref<8x128xf32, #tpu.memory_space<vmem>>, vector<8x128xf32>,
    } else {
    }
    %c0 = arith.constant 0 : index
    %c0_1 = arith.constant 0 : index
    %c0_2 = arith.constant 0 : index
    %3 = vector.load %arg3[%c0, %c0_1, %c0_2] : memref<1x8x128xf32, #tpu.memory_space<vmem>>, vector<1x8x128xf32>
    %4 = vector.shape_cast %3 : vector<1x8x128xf32> to vector<8x128xf32>
    %cst = arith.constant 0.176776692 : f32
    %5 = vector.broadcast %cst : f32 to vector<8x128xf32>
    %6 = arith.mulf %4, %5 : vector<8x128xf32>
    %c0_3 = arith.constant 0 : index
    %c0_4 = arith.constant 0 : index
    %c0_5 = arith.constant 0 : index
    %7 = vector.load %arg4[%c0_3, %c0_4, %c0_5] : memref<1x8x128xf32, #tpu.memory_space<vmem>>, vector<1x8x128xf32>
    %8 = vector.shape_cast %7 : vector<1x8x128xf32> to vector<8x128xf32>
    %cst_6 = arith.constant dense<0.000000e+00> : vector<8x8xf32>
    %9 = tpu.matmul %6, %8, %cst_6 {dimension_numbers = #tpu.dot_dimension_numbers<[1], [1], [0], [0], [0, 0, 1, 0], [], []>} : vector<8x128xf32>, vector<8x128xf32>, vector<8x8xf32> -> vector<8x8xf32>
    %c0_7 = arith.constant 0 : index
    %c0_8 = arith.constant 0 : index
    %10 = vector.load %arg7[%c0_7, %c0_8] : memref<8x1xf32, #tpu.memory_space<vmem>>, vector<8x1xf32>
    %cst_9 = arith.constant dense<0xFF800000> : vector<8xf32>
    %11 = vector.multi_reduction <maximumf>, %9, %cst_9 [1] : vector<8x8xf32> to vector<8xf32>
    %12 = vector.shape_cast %11 : vector<8xf32> to vector<8x1xf32>
    %13 = arith.maximumf %10, %12 : vector<8x1xf32>
    %14 = arith.subf %10, %13 : vector<8x1xf32>
    %15 = math.exp %14 : vector<8x1xf32>
    %16 = vector.broadcast %13 : vector<8x1xf32> to vector<8x8xf32>
    %17 = arith.subf %9, %16 : vector<8x8xf32>
    %18 = math.exp %17 : vector<8x8xf32>
    %c0_10 = arith.constant 0 : index
    %c0_11 = arith.constant 0 : index
    %19 = vector.load %arg8[%c0_10, %c0_11] : memref<8x1xf32, #tpu.memory_space<vmem>>, vector<8x1xf32>
    %20 = arith.mulf %15, %19 : vector<8x1xf32>
    %cst_12 = arith.constant dense<0.000000e+00> : vector<8xf32>
    %21 = vector.multi_reduction <add>, %18, %cst_12 [1] : vector<8x8xf32> to vector<8xf32>
    %22 = vector.shape_cast %21 : vector<8xf32> to vector<8x1xf32>
    %23 = arith.addf %20, %22 : vector<8x1xf32>
    %c0_13 = arith.constant 0 : index
    %c0_14 = arith.constant 0 : index
    %24 = vector.load %arg8[%c0_13, %c0_14] : memref<8x1xf32, #tpu.memory_space<vmem>>, vector<8x1xf32>
    tpu.vector_store %arg8[%c0_13, %c0_14], %23 {strides = array<i32>} : memref<8x1xf32, #tpu.memory_space<vmem>>, vector<8x1xf32>,
    %c0_15 = arith.constant 0 : index
    %c0_16 = arith.constant 0 : index
    %25 = vector.load %arg9[%c0_15, %c0_16] : memref<8x128xf32, #tpu.memory_space<vmem>>, vector<8x128xf32>
    %26 = vector.broadcast %15 : vector<8x1xf32> to vector<8x128xf32>
    %27 = arith.mulf %26, %25 : vector<8x128xf32>
    %c0_17 = arith.constant 0 : index
    %c0_18 = arith.constant 0 : index
    %c0_19 = arith.constant 0 : index
    %28 = vector.load %arg5[%c0_17, %c0_18, %c0_19] : memref<1x8x128xf32, #tpu.memory_space<vmem>>, vector<1x8x128xf32>
    %29 = vector.shape_cast %28 : vector<1x8x128xf32> to vector<8x128xf32>
    %cst_20 = arith.constant dense<0.000000e+00> : vector<8x128xf32>
    %30 = tpu.matmul %18, %29, %cst_20 {dimension_numbers = #tpu.dot_dimension_numbers<[1], [0], [0], [1], [0, 0, 1, 1], [], []>} : vector<8x8xf32>, vector<8x128xf32>, vector<8x128xf32> -> vector<8x128xf32>
    %31 = arith.addf %27, %30 : vector<8x128xf32>
    %c0_21 = arith.constant 0 : index
    %c0_22 = arith.constant 0 : index
    %32 = vector.load %arg9[%c0_21, %c0_22] : memref<8x128xf32, #tpu.memory_space<vmem>>, vector<8x128xf32>
    tpu.vector_store %arg9[%c0_21, %c0_22], %31 {strides = array<i32>} : memref<8x128xf32, #tpu.memory_space<vmem>>, vector<8x128xf32>,
    %c0_23 = arith.constant 0 : index
    %c0_24 = arith.constant 0 : index
    %33 = vector.load %arg7[%c0_23, %c0_24] : memref<8x1xf32, #tpu.memory_space<vmem>>, vector<8x1xf32>
    tpu.vector_store %arg7[%c0_23, %c0_24], %13 {strides = array<i32>} : memref<8x1xf32, #tpu.memory_space<vmem>>, vector<8x1xf32>,
    %c0_i32_25 = arith.constant 0 : i32
    %34 = arith.cmpi eq, %arg2, %c0_i32_25 : i32
    %35 = arith.extui %34 : i1 to i32
    %c0_i32_26 = arith.constant 0 : i32
    %36 = arith.cmpi ne, %35, %c0_i32_26 : i32
    scf.if %36 {
      %c0_27 = arith.constant 0 : index
      %c0_28 = arith.constant 0 : index
      %37 = vector.load %arg8[%c0_27, %c0_28] : memref<8x1xf32, #tpu.memory_space<vmem>>, vector<8x1xf32>
      %38 = tpu.reciprocal %37 {approx = true} : vector<8x1xf32> -> vector<8x1xf32>
      %c0_29 = arith.constant 0 : index
      %c0_30 = arith.constant 0 : index
      %39 = vector.load %arg9[%c0_29, %c0_30] : memref<8x128xf32, #tpu.memory_space<vmem>>, vector<8x128xf32>
      %40 = vector.broadcast %38 : vector<8x1xf32> to vector<8x128xf32>
      %41 = arith.mulf %39, %40 : vector<8x128xf32>
      %c0_31 = arith.constant 0 : index
      %c0_32 = arith.constant 0 : index
      %c0_33 = arith.constant 0 : index
      %42 = vector.load %arg6[%c0_31, %c0_32, %c0_33] : memref<1x8x128xf32, #tpu.memory_space<vmem>>, vector<1x8x128xf32>
      %43 = vector.shape_cast %42 : vector<1x8x128xf32> to vector<8x128xf32>
      %44 = vector.shape_cast %41 : vector<8x128xf32> to vector<1x8x128xf32>
      tpu.vector_store %arg6[%c0_31, %c0_32, %c0_33], %44 {strides = array<i32>} : memref<1x8x128xf32, #tpu.memory_space<vmem>>, vector<1x8x128xf32>,
    } else {
    }
    return
  }
  func.func @transform_0(%arg0: i32, %arg1: i32, %arg2: i32) -> (i32, i32, i32) {
    %c0_i32 = arith.constant 0 : i32
    %c0_i32_0 = arith.constant 0 : i32
    return %arg0, %arg1, %c0_i32 : i32, i32, i32
  }
  func.func @transform_1(%arg0: i32, %arg1: i32, %arg2: i32) -> (i32, i32, i32) {
    %c0_i32 = arith.constant 0 : i32
    %c0_i32_0 = arith.constant 0 : i32
    return %arg0, %arg2, %c0_i32 : i32, i32, i32
  }
  func.func @transform_2(%arg0: i32, %arg1: i32, %arg2: i32) -> (i32, i32, i32) {
    %c0_i32 = arith.constant 0 : i32
    %c0_i32_0 = arith.constant 0 : i32
    return %arg0, %arg2, %c0_i32 : i32, i32, i32
  }
  func.func @transform_3(%arg0: i32, %arg1: i32, %arg2: i32) -> (i32, i32, i32) {
    %c0_i32 = arith.constant 0 : i32
    %c0_i32_0 = arith.constant 0 : i32
    return %arg0, %arg1, %c0_i32 : i32, i32, i32
  }
}

</mosaic_0001>

<bundles_post_ra>
// kernel: tpu_custom_call.1
= control target key start
LH: loop header
LB: loop body
LE: loop exit
PB: predicated region body
PF: predicated region fallthrough
CT: control target
= control target key end

     0   :  { %s1154_s0 = inlined_call_operand.hbm [shape: f32[2,8,128], index: 0, kind: input, shape index: {}]   ;;  %s1155_s1 = inlined_call_operand.hbm [shape: f32[2,8,128], index: 1, kind: input, shape index: {}]   ;;  %s1156_s2 = inlined_call_operand.hbm [shape: f32[2,8,128], index: 2, kind: input, shape index: {}]   ;;  %s1157_s3 = inlined_call_operand.hbm [shape: f32[2,8,128], index: 3, kind: output, shape index: {}]  }
   0x1   :  { %1161 = sst [smem:[#allocation17_spill]] %s1155_s1 }
   0x2   :  { %8 = vsyncpa [#allocation6], 0 }
   0x3   :  { %10 = vsyncpa [#allocation6 + $0x1], 0 }
   0x4   :  { %11 = vsyncpa [#allocation9], 0 }
   0x5   :  { %13 = vsyncpa [#allocation9 + $0x1], 0 }
   0x6   :  { %14 = vsyncpa [#allocation7], 0 }
   0x7   :  { %16 = vsyncpa [#allocation7 + $0x1], 0  ;;  %s949_s12 = smov 0   ;;  %s951_s13 = smov 0  }
   0x8   :  { %s953_s14 = smov 0   ;;  %s955_s15 = smov 0  }
   0x9   :  { %s957_s16 = smov 0   ;;  %s959_s17 = smov 0  }
   0xa LB: > { %1162 = sst [smem:[#allocation15_spill]] %s915_s16  ;;  %s980_s18 = sadd.s32 4294967295, %s919_s17   ;;  %s919_s17 = sphi %s959_s17, %s22_s17   ;;  %s915_s16 = sphi %s957_s16, %s1174_s16   ;;  %s911_s15 = sphi %s955_s15, %s1173_s15   ;;  %s907_s14 = sphi %s953_s14, %s1177_s14   ;;  %s903_s13 = sphi %s951_s13, %s1176_s13   ;;  %s899_s12 = sphi %s949_s12, %s1175_s12  }
   0xb   : > { %s634_s19 = sadd.s32 4294967294, %s919_s17   ;;  %s41_s20 = sadd.s32 1, %s915_s16 }
   0xc   : > { %s50_s21 = sadd.s32 1, %s907_s14  ;;  %p43_p0 = scmp.ge.s32.totalorder %s41_s20, 2 }
   0xd   : > { %p57_p1 = scmp.ne.s32.totalorder %s907_s14, %s903_s13  ;;  %p58_p2 = scmp.eq.s32.totalorder %s919_s17, 0 }
   0xe   : > { %p63_p3 = scmp.ne.s32.totalorder %s903_s13, %s899_s12  ;;  %s1179_s20 = smov (%p43_p0, %s41_s20), 0 }
   0xf   : > { %1163 = sst [smem:[#allocation16_spill]] %s1179_s20  ;;  %p992_p4 = por %p58_p2, %p57_p1 }
  0x10   : > { %p64_p5 = scmp.eq.s32.totalorder %s980_s18, 0  ;;  %s45_s23 = ssub.s32 %s915_s16, %s1179_s20 }
  0x11   : > { %p145_p6 = scmp.eq.s32.totalorder %s980_s18, 1  ;;  %p48_p7 = scmp.eq.s32.totalorder %s45_s23, 0 }
  0x12   : > { %p1000_p8 = por %p64_p5, %p63_p3  ;;  %p151_p10 = scmp.eq.s32.totalorder %s634_s19, 1 }
  0x13   : > { %p1004_p9 = por %p145_p6, %p57_p1  ;;  %p689_p13 = scmp.lt.s32.totalorder %s919_s17, 2 }
  0x14   : > { %s1009_s26 = scalar_select %p48_p7, %s907_s14, %s50_s21  }
  0x15   : > { %p1011_p11 = por %p151_p10, %p63_p3  ;;  %s1158_s28 = sand.u32 1, %s907_s14  }
  0x16   : > { %s1020_s29 = sshll.u32 %s1158_s28, 3  ;;  %s1023_s30 = sshll.u32 %s915_s16, 7 }
  0x17   : > { %p1027_p0 = pnand %p689_p13, %p992_p4  ;;  %s190_s5 = sand.u32 1, %s919_s17  }
  0x18   : > { %s1169_s1 = sld [smem:[#allocation17_spill]]  ;;  %s194_s9 = scalar_lea.vmem [#allocation8], %s1020_s29 }
  0x19   : > { %s202_s10 = sshll.u32 %s194_s9, 4  ;;  %p643_p1 = scmp.ge.s32.totalorder %s919_s17, 1  ;;  %s203_s10 = int_to_ptr.vmem [resolvable:$true] %s202_s10 }
  0x1a   : > { %p226_p2 = scmp.lt.s32.totalorder %s919_s17, 3  ;;  %s1039_s11 = scalar_lea.sflag [#allocation9], %s190_s5 }
  0x1b   : > { %p753_p3 = pneg %p1027_p0  ;;  %s764_s19 = scalar_lea.vmem %s203_s10, 128 }
  0x1c   : > { %p765_p4 = scmp.ne.s32.totalorder %s203_s10, %s764_s19  ;;  %s921_s21 = smov [#allocation8]  }
  0x1d   : > { %s769_s22 = sshll.u32 %s921_s21, 4  ;;  %s770_s22 = int_to_ptr.vmem [resolvable:$false] %s769_s22 }
  0x1e   : > { %s200_s8 = scalar_lea.hbm %s1169_s1, %s1023_s30  ;;  %p767_p5 = pnand %p765_p4, %p753_p3 }
  0x1f   : > { %s771_s23 = scalar_lea.vmem %s770_s22, 256  ;;  %p772_p7 = scmp.lt.s32.totalorder %s203_s10, %s770_s22 }
  0x20   : > { %p768_p6 = pneg %p767_p5  ;;  %p773_p10 = scmp.lt.s32.totalorder %s771_s23, %s764_s19 }
  0x22   : > { %p774_p13 = por %p773_p10, %p772_p7 }
  0x24   : > { %p775_p12 = pnand %p774_p13, %p768_p6 }
  0x26   : > { %778 = shalt.err (!%p775_p12)
}
  0x27   : > { %681 = dma.hbm_to_vmem [thread:$0]  (!%p1027_p0), %s200_s8, 128, %s203_s10, %s1039_s11  }
  0x28   : > { %p1053_p4 = pnand %p643_p1, %p226_p2  ;;  %s181_s9 = scalar_lea.hbm %s1154_s0, %s1023_s30 }
  0x29   : > { %s175_s19 = scalar_lea.vmem [#allocation5], %s1020_s29  ;;  %s219_s28 = scalar_lea.hbm %s1156_s2, %s1023_s30 }
  0x2a   : > { %s183_s21 = sshll.u32 %s175_s19, 4  ;;  %s1171_s1 = sand.u32 1, %s907_s14   ;;  %s184_s21 = int_to_ptr.vmem [resolvable:$true] %s183_s21 }
  0x2b   : > { %s172_s20 = scalar_lea.sflag [#allocation6], %s1171_s1  ;;  %s792_s8 = scalar_lea.vmem %s184_s21, 128 }
  0x2c   : > { %p793_p12 = scmp.ne.s32.totalorder %s184_s21, %s792_s8  ;;  %s922_s10 = smov [#allocation5]  }
  0x2d   : > { %s797_s16 = sshll.u32 %s922_s10, 4  ;;  %s798_s16 = int_to_ptr.vmem [resolvable:$false] %s797_s16 }
  0x2e   : > { %p795_p1 = pnand %p793_p12, %p753_p3  ;;  %s799_s6 = scalar_lea.vmem %s798_s16, 256 }
  0x2f   : > { %p800_p5 = scmp.lt.s32.totalorder %s184_s21, %s798_s16  ;;  %p801_p6 = scmp.lt.s32.totalorder %s799_s6, %s792_s8 }
  0x30   : > { %p796_p2 = pneg %p795_p1 }
  0x31   : > { %p802_p7 = por %p801_p6, %p800_p5 }
  0x33   : > { %p803_p10 = pnand %p802_p7, %p796_p2 }
  0x35   : > { %806 = shalt.err (!%p803_p10)
}
  0x36   : > { %678 = dma.hbm_to_vmem [thread:$0]  (!%p1027_p0), %s181_s9, 128, %s184_s21, %s172_s20  }
  0x37   : > { %s213_s1 = scalar_lea.vmem [#allocation10], %s1020_s29  ;;  %s923_s22 = smov [#allocation10]  }
  0x38   : > { %s221_s7 = sshll.u32 %s213_s1, 4  ;;  %s825_s16 = sshll.u32 %s923_s22, 4  ;;  %s222_s7 = int_to_ptr.vmem [resolvable:$true] %s221_s7  ;;  %s826_s16 = int_to_ptr.vmem [resolvable:$false] %s825_s16 }
  0x39   : > { %s820_s19 = scalar_lea.vmem %s222_s7, 128  ;;  %s827_s23 = scalar_lea.vmem %s826_s16, 256 }
  0x3a   : > { %p821_p13 = scmp.ne.s32.totalorder %s222_s7, %s820_s19  ;;  %p828_p2 = scmp.lt.s32.totalorder %s222_s7, %s826_s16 }
  0x3b   : > { %p829_p5 = scmp.lt.s32.totalorder %s827_s23, %s820_s19 }
  0x3c   : > { %p823_p12 = pnand %p821_p13, %p753_p3 }
  0x3d   : > { %p830_p6 = por %p829_p5, %p828_p2 }
  0x3e   : > { %p824_p1 = pneg %p823_p12 }
  0x40   : > { %p831_p7 = pnand %p830_p6, %p824_p1 }
  0x42   : > { %834 = shalt.err (!%p831_p7)
}
  0x43   : > { %684 = dma.hbm_to_vmem [thread:$0]  (!%p1027_p0), %s219_s28, 128, %s222_s7, %s1039_s11  }
  0x44   : > { %230 = sbr.rel (%p1053_p4) target bundleno = 861 (0x35d), region = 32  ;;  %s1088_s9 = sand.u32 (!%p1053_p4), 1, %s903_s13  }
  0x45   : > { %s1091_s21 = sshll.u32 (!%p1053_p4), %s1088_s9, 3  ;;  %s233_s4 = scalar_lea.sflag (!%p1053_p4), [#allocation6], %s1088_s9 }
  0x46   : > { %s236_s8 = scalar_lea.vmem (!%p1053_p4), [#allocation5], %s1091_s21 }
  0x49   : > { %886 = dma.done.wait (%p1000_p8), %s233_s4, 128  }
  0x4a   : > { %888 = vsyncadd (%p1000_p8), %s233_s4, 4294967168  ;;  %s241_s28 = sand.u32 1, %s980_s18   ;;  %s245_s11 = scalar_lea.vmem [#allocation8], %s1091_s21 }
  0x4b   : > { %s242_s30 = scalar_lea.sflag [#allocation9], %s241_s28 }
  0x4c   : > { %890 = dma.done.wait (%p1000_p8), %s242_s30, 256  }
  0x4d   : > { %892 = vsyncadd (%p1000_p8), %s242_s30, 4294967040  ;;  %vm291_vm0 = vcmask 7168   ;;  %v924_v0 = vmov 0.0   ;;  %vm925_vm1 = vmmov 0   ;;  %v297_v1 = vld [vmem:[%s245_s11] sm:$0xff]  ;;  %v295_v2 = vld [vmem:[%s236_s8] sm:$0xff] }
  0x4e   : > { %293 = vst.msk [vmem:[#allocation3] sm:$0xff] %vm291_vm0, %v924_v0  ;;  %657 = vmatprep.subr.mxu0 %v924_v0  ;;  %659 = vmatprep.mubr.msk.f32.mxu0 %vm925_vm1, %v924_v0  ;;  %v296_v3 = vmul.f32 0.17677669, %v295_v2  ;;  %v926_v4 = vmov -inf   ;;  %vm369_vm2 = vcmask 64512   ;;  %v927_v8 = vmov 0  }
  0x4f   : > { %662 = vmatprep.subr.mxu1 %v924_v0  ;;  %664 = vmatprep.mubr.msk.f32.mxu1 %vm925_vm1, %v924_v0  ;;  %292 = vst.msk [vmem:[#allocation2] sm:$0xff] %vm291_vm0, %v926_v4  ;;  %s254_s18 = scalar_lea.vmem [#allocation10], %s1091_s21  ;;  %s650_s24 = sshll.u32 %s911_s15, 7 }
  0x50   : > { %658 = vmatpush3.xpose.msra.mxu0 %v297_v1  ;;  %743 = vset.pattern.permute.xlu0 %v927_v8  ;;  %v400_v13 = vld [vmem:[%s254_s18] sm:$0xff]  ;;  %s286_s5 = scalar_lea.vmem [#allocation11], %s1091_s21  ;;  %s503_s7 = scalar_lea.hbm %s1157_s3, %s650_s24 }
  0x51   : > { %744 = vset.pattern.permute.xlu1 %v927_v8  ;;  %663 = vmatpush3.msra.mxu1 %v400_v13  ;;  %s505_s10 = sshll.u32 %s286_s5, 4  ;;  %s491_s19 = scalar_lea.sflag [#allocation7], %s1088_s9  ;;  %s506_s10 = int_to_ptr.vmem [resolvable:$true] %s505_s10 }
  0x52   : > { %s835_s22 = scalar_lea.vmem %s506_s10, 128  ;;  %s928_s16 = smov [#allocation11]  }
  0x53   : > { %660 = vmatmul.mubr.f32.vlgmr.msra.gmra.mxu0 %v296_v3  ;;  %p836_p8 = scmp.ne.s32.totalorder %s506_s10, %s835_s22  ;;  %s839_s23 = sshll.u32 %s928_s16, 4  ;;  %s840_s23 = int_to_ptr.vmem [resolvable:$false] %s839_s23 }
  0x54   : > { %s841_s15 = scalar_lea.vmem %s840_s23, 256  ;;  %p842_p4 = scmp.lt.s32.totalorder %s506_s10, %s840_s23 }
  0x55   : > { %v385_v21 = vld [vmem:[#allocation3] sm:$0xff]  ;;  %p837_p0 = pnand %p836_p8, %p1004_p9  ;;  %p843_p10 = scmp.lt.s32.totalorder %s841_s15, %s835_s22 }
  0x56   : > { %v368_v9 = vld [vmem:[#allocation2] sm:$0xff] }
  0x57   : > { %p838_p3 = pneg %p837_p0  ;;  %p844_p13 = por %p843_p10, %p842_p4 }
  0x59   : > { %p845_p12 = pnand %p844_p13, %p838_p3 }
 0x113   : > { %v364_v5 = vpop.f32.mrf.mxu0 }
 0x114   : > { %v370_v6 = vsel %vm369_vm2, %v364_v5, -inf }
 0x115   : > { %371 = vmax.xlane.f32.xlu0 %v370_v6  ;;  %v661_v7 = vpop.f32.mrf.mxu0 }
 0x19e   : > { %v372_v10 = vpop.xlane.xlu0 %371 }
 0x19f   : > { %v373_v11 = vmax.f32 %v368_v9, %v372_v10 }
 0x1a1   : > { %v374_v12 = vsub.f32 %v368_v9, %v373_v11  ;;  %476 = vst.msk [vmem:[#allocation2] sm:$0xff] %vm291_vm0, %v373_v11  ;;  %379 = vperm.xlu0 %743, %v373_v11  }
 0x1a3   : > { %v375_v18 = vmul.f32 1.442695, %v374_v12 }
 0x21c   : > { %v380_v14 = vpop.permute.xlu0 %379 }
 0x21d   : > { %v382_v15 = vsub.f32 %v364_v5, %v380_v14 }
 0x21f   : > { %v383_v16 = vmul.f32 1.442695, %v382_v15 }
 0x221   : > { %745 = vpow2.f32 %v383_v16 }
 0x222   : > { %747 = vpow2.f32 %v375_v18 }
 0x22e   : > { %v746_v17 = vpop.eup %745 }
 0x22f   : > { %665 = vmatmul.mubr.msk.f32.vlgmr.msra.gmra.mxu1 %vm369_vm2, %v746_v17  ;;  %v387_v19 = vsel %vm369_vm2, %v746_v17, 0.0  ;;  %v748_v20 = vpop.eup %747 }
 0x230   : > { %388 = vadd.xlane.f32.xlu1 %v387_v19  ;;  %v386_v22 = vmul.f32 %v748_v20, %v385_v21 }
 0x241   : > { %396 = vperm.xlu1 %744, %v748_v20  }
 0x2b9   : > { %v389_v23 = vpop.xlane.xlu1 %388 }
 0x2ba   : > { %v390_v24 = vadd.f32 %v389_v23, %v386_v22 }
 0x2bc   : > { %392 = vst.msk [vmem:[#allocation3] sm:$0xff] %vm291_vm0, %v390_v24 }
 0x2bd   : > { %v397_v29 = vpop.permute.xlu1 %396 }
 0x2be   : > { %v399_v30 = vmul.f32 0.0, %v397_v29 }
 0x2c3   : > { %v480_v25 = vld [vmem:[#allocation3] sm:$0xff] }
 0x2c4   : > { %749 = vrcp.f32 %v480_v25 }
 0x2d1   : > { %v750_v26 = vpop.eup %749 }
 0x2d2   : > { %485 = vperm.xlu1 %744, %v750_v26  }
 0x2ef   : > { %v470_v27 = vpop.f32.mrf.mxu1 }
 0x2f0   : > { %v474_v31 = vadd.f32 %v470_v27, %v399_v30 }
 0x2f1   : > { %v666_v28 = vpop.f32.mrf.mxu1 }
 0x34d   : > { %v486_v32 = vpop.permute.xlu1 %485 }
 0x34e   : > { %v488_v33 = vmul.f32 %v486_v32, %v474_v31 }
 0x350   : > { %489 = vst [vmem:[%s286_s5] sm:$0xff] %v488_v33 }
 0x351   : > { %848 = shalt.err (!%p845_p12)
}
 0x352   : > { %s849_s20 = scalar_lea.hbm %s503_s7, 128  ;;  %s853_s21 = scalar_lea.hbm %s1157_s3, 256 }
 0x353   : > { %p850_p1 = scmp.ne.s32.totalorder %s503_s7, %s849_s20  ;;  %p854_p6 = scmp.lt.s32.totalorder %s503_s7, %s1157_s3 }
 0x354   : > { %p855_p7 = scmp.lt.s32.totalorder %s853_s21, %s849_s20 }
 0x355   : > { %p851_p2 = pnand %p850_p1, %p1004_p9 }
 0x356   : > { %p856_p8 = por %p855_p7, %p854_p6 }
 0x357   : > { %p852_p5 = pneg %p851_p2 }
 0x359   : > { %p857_p0 = pnand %p856_p8, %p852_p5 }
 0x35b   : > { %860 = shalt.err (!%p857_p0)
}
 0x35c   : > { %673 = dma.vmem_to_hbm [thread:$0]  (%p1004_p9), %s506_s10, 128, %s503_s7, %s491_s19  }
 0x35d PF: > { %s517_s28 = sand.u32 1, %s899_s12   ;;  %p1172_p3 = scmp.ge.s32.totalorder %s919_s17, 2 }
 0x35e   : > { %s518_s30 = scalar_lea.sflag [#allocation7], %s517_s28 }
 0x35f   : > { %p686_p4 = pnand %p1172_p3, %p1011_p11 }
 0x361   : > { %p687_p10 = pneg %p686_p4 }
 0x363   : > { %894 = dma.done.wait (%p687_p10), %s518_s30, 128  }
 0x364   : > { %896 = vsyncadd (%p687_p10), %s518_s30, 4294967168  ;;  %s22_s17 = sadd.s32 1, %s919_s17   ;;  %s1173_s15 = sld [smem:[#allocation15_spill]] }
 0x365   : > { %p19_p13 = scmp.ge.s32.totalorder %s22_s17, 4   ;;  %s1174_s16 = sld [smem:[#allocation16_spill]] }
 0x366   : > { %s1175_s12 = smov %s903_s13  ;;  %s1176_s13 = smov %s907_s14 }
 0x367   : > { %s1177_s14 = smov %s1009_s26  ;;  %21 = sbr.rel (!%p19_p13) target bundleno = 10 (0xa), region = 109 }
 0x36c   :  { %523 = vsyncpa [#allocation6], 1 }
 0x36d   :  { %525 = vsyncpa [#allocation6 + $0x1], 1 }
 0x36e   :  { %526 = vsyncpa [#allocation9], 1 }
 0x36f   :  { %528 = vsyncpa [#allocation9 + $0x1], 1 }
 0x370   :  { %529 = vsyncpa [#allocation7], 1 }
 0x371   :  { %531 = vsyncpa [#allocation7 + $0x1], 1 }

</bundles_post_ra>
